<compile_context>
chip_gen: v6e
topology: v6e:2x2x1
jax: 0.10.0
libtpu: 0.0.40
codegen_flags: <defaults>
</compile_context>

<pallas_src>
import jax
import jax.numpy as jnp
from jax import lax
from jax.experimental import pallas as pl
from jax.experimental.pallas import tpu as pltpu


def _pick_spatial_tile(hw_pad, per_lane_bytes, n_batch):
    """Largest 128-multiple divisor of hw_pad whose double-buffered block
    footprint stays under ~20 MiB; shrunk if it would leave fewer than ~4
    grid steps (so ("parallel","parallel") can shard across v7x's 2 TCs)."""
    budget = 20 * 1024 * 1024
    cap = max(128, (budget // max(2 * per_lane_bytes, 1)) // 128 * 128)
    ts = 128
    t = min(cap, hw_pad)
    while t >= 128:
        if hw_pad % t == 0:
            ts = t
            break
        t -= 128
    # keep a few grid steps for megacore sharding on v7x
    while (n_batch * (hw_pad // ts) < 4 and ts % 256 == 0
           and hw_pad % (ts // 2) == 0):
        ts //= 2
    return ts


def _make_upconv_kernel(cin, use_mxu):
    def kernel(x_ref, w_ref, b_ref, out_ref):
        # x_ref  : (1, Cin, TS)   flattened-spatial tile, spatial on the lane axis
        # w_ref  : (Cout, Cin)    1x1 conv weights
        # b_ref  : (Cout, 1)      bias
        # out_ref: (1, Cout, TS)  1x1 conv result (upsample is done by the
        #                         fused XLA broadcast in the wrapper)
        x = x_ref[0].astype(jnp.float32)       # (Cin, TS)
        w = w_ref[...].astype(jnp.float32)     # (Cout, Cin)
        b = b_ref[...].astype(jnp.float32)     # (Cout, 1)

        if use_mxu:
            # Realistic UNet channel counts: one MXU matmul keeps the kernel
            # memory-bound instead of VALU-slot-bound.
            acc = jnp.dot(w, x,
                          precision=lax.Precision.HIGHEST,
                          preferred_element_type=jnp.float32) + b
        else:
            # Tiny-channel regime: MXU would be <1% utilized; do Cin broadcast
            # multiply-adds on the VPU.  Lane axis (TS) stays fully dense.
            cout, ts = out_ref.shape[1], out_ref.shape[2]
            acc = jnp.broadcast_to(b, (cout, ts))
            for ci in range(cin):
                acc = acc + w[:, ci:ci + 1] * x[ci:ci + 1, :]

        out_ref[0] = acc.astype(out_ref.dtype)

    return kernel


def upconv_forward(x_nchw, w, b, *, out_dtype=None, mxu_min_ch=8):
    """UpConv forward: nearest x2 upsample followed by 1x1 conv (stride 1).

    x_nchw: (N, Cin, H, W); w: (Cout, Cin, 1, 1) PyTorch OIHW; b: (Cout,).
    Returns (N, Cout, 2H, 2W) NCHW, matching the PyTorch module.
    """
    N, Cin, H, W = x_nchw.shape
    Cout = w.shape[0]
    assert w.shape == (Cout, Cin, 1, 1), "module defaults are kernel_size=1, stride=1"
    # TODO(synk): kernel_size>1 / stride>1 Conv2d variants would need a halo /
    # strided-window conv; not implemented (module defaults are k=1, s=1).

    out_dtype = jnp.dtype(out_dtype) if out_dtype is not None else x_nchw.dtype

    HW = H * W
    HW_pad = ((HW + 127) // 128) * 128            # lane-dense last dim

    x_flat = x_nchw.reshape(N, Cin, HW)           # free view (NCHW row-major)
    if HW_pad != HW:
        x_flat = jnp.pad(x_flat, ((0, 0), (0, 0), (0, HW_pad - HW)))

    wmat = w.reshape(Cout, Cin)
    bcol = b.reshape(Cout, 1)

    in_b = x_flat.dtype.itemsize
    out_b = jnp.dtype(out_dtype).itemsize
    TS = _pick_spatial_tile(HW_pad, Cin * in_b + Cout * out_b, N)

    use_mxu = min(Cin, Cout) >= mxu_min_ch
    kernel = _make_upconv_kernel(Cin, use_mxu)

    # Explicit scoped-VMEM budget (double-buffered in/out blocks + weights).
    block_vmem = 2 * TS * (Cin * in_b + Cout * out_b)
    block_vmem += 2 * (wmat.size * wmat.dtype.itemsize + bcol.size * bcol.dtype.itemsize)
    vmem_limit = int(min(48 * 1024 * 1024, max(16 * 1024 * 1024, block_vmem + (4 << 20))))

    cost = pl.CostEstimate(
        flops=2 * N * HW_pad * Cin * Cout,
        transcendentals=0,
        bytes_accessed=int(x_flat.size * in_b
                           + wmat.size * wmat.dtype.itemsize
                           + bcol.size * bcol.dtype.itemsize
                           + N * Cout * HW_pad * out_b),
    )

    conv_flat = pl.pallas_call(
        kernel,
        out_shape=jax.ShapeDtypeStruct((N, Cout, HW_pad), out_dtype),
        grid_spec=pltpu.PrefetchScalarGridSpec(
            num_scalar_prefetch=0,
            grid=(N, HW_pad // TS),
            in_specs=[
                pl.BlockSpec((1, Cin, TS), lambda n, s: (n, 0, s)),
                pl.BlockSpec((Cout, Cin), lambda n, s: (0, 0)),
                pl.BlockSpec((Cout, 1), lambda n, s: (0, 0)),
            ],
            out_specs=pl.BlockSpec((1, Cout, TS), lambda n, s: (n, 0, s)),
        ),
        compiler_params=pltpu.CompilerParams(
            dimension_semantics=("parallel", "parallel"),
            vmem_limit_bytes=vmem_limit),
        cost_estimate=cost,
    )(x_flat, wmat, bcol)

    # Epilogue: drop spatial padding, then nearest-x2 upsample as one fused
    # XLA broadcast copy (1 read + 4 write of the conv result, NO transpose).
    y = conv_flat[:, :, :HW].reshape(N, Cout, H, 1, W, 1)
    y = jnp.broadcast_to(y, (N, Cout, H, 2, W, 2))
    return y.reshape(N, Cout, 2 * H, 2 * W)


def _reference_forward(x_nchw, w, b):
    """Pure-JAX reference of the PyTorch forward: nearest x2 upsample + 1x1 conv."""
    x_up = jnp.repeat(jnp.repeat(x_nchw, 2, axis=2), 2, axis=3)
    dn = lax.conv_dimension_numbers(x_up.shape, w.shape, ("NCHW", "OIHW", "NCHW"))
    y = lax.conv_general_dilated(
        x_up, w, window_strides=(1, 1), padding="VALID", dimension_numbers=dn,
        precision=lax.Precision.HIGHEST)
    return y + b[None, :, None, None]


if __name__ == "__main__":
    key = jax.random.PRNGKey(0)
    k_x, k_w, k_b, k2_x, k2_w, k2_b = jax.random.split(key, 6)

    # Case 1: tiny channels (VPU path), H*W a multiple of 128.
    N, Cin, H, W, Cout = 2, 4, 16, 16, 8
    x = jax.random.normal(k_x, (N, Cin, H, W), dtype=jnp.float32)
    w = 0.1 * jax.random.normal(k_w, (Cout, Cin, 1, 1), dtype=jnp.float32)
    b = 0.1 * jax.random.normal(k_b, (Cout,), dtype=jnp.float32)

    out = jax.block_until_ready(upconv_forward(x, w, b))
    ref = jax.block_until_ready(_reference_forward(x, w, b))
    assert out.shape == (N, Cout, 2 * H, 2 * W), out.shape
    assert jnp.allclose(out, ref, atol=1e-5, rtol=1e-5), float(jnp.max(jnp.abs(out - ref)))

    # Case 2: larger channels (MXU path) + H*W not a multiple of 128 (padding path).
    # Tolerance covers MXU reduced-precision passes if HIGHEST is not honored.
    N2, Cin2, H2, W2, Cout2 = 2, 32, 8, 8, 16
    x2 = jax.random.normal(k2_x, (N2, Cin2, H2, W2), dtype=jnp.float32)
    w2 = 0.1 * jax.random.normal(k2_w, (Cout2, Cin2, 1, 1), dtype=jnp.float32)
    b2 = 0.1 * jax.random.normal(k2_b, (Cout2,), dtype=jnp.float32)

    out2 = jax.block_until_ready(upconv_forward(x2, w2, b2))
    ref2 = jax.block_until_ready(_reference_forward(x2, w2, b2))
    assert out2.shape == (N2, Cout2, 2 * H2, 2 * W2), out2.shape
    assert jnp.allclose(out2, ref2, atol=5e-3, rtol=5e-3), float(jnp.max(jnp.abs(out2 - ref2)))

    print("KERNEL_OK")
</pallas_src>

<mosaic_0001>
module attributes {stable_mosaic.version = 11 : i64} {
  func.func @kernel(%arg0: i32, %arg1: i32, %arg2: memref<1x4x128xf32, #tpu.memory_space<vmem>>, %arg3: memref<8x4xf32, #tpu.memory_space<vmem>>, %arg4: memref<8x1xf32, #tpu.memory_space<vmem>>, %arg5: memref<1x8x128xf32, #tpu.memory_space<vmem>>) attributes {dimension_semantics = [#tpu.dimension_semantics<parallel>, #tpu.dimension_semantics<parallel>], iteration_bounds = array<i64: 2, 2>, scalar_prefetch = 0 : i64, scratch_operands = 0 : i64, tpu.core_type = #tpu.core_type<tc>, window_params = [{transform_indices = @transform_0, window_bounds = array<i64: 1, 4, 128>}, {pipeline_mode = #tpu.pipeline_mode<synchronous>, transform_indices = @transform_1, window_bounds = array<i64: 8, 4>}, {pipeline_mode = #tpu.pipeline_mode<synchronous>, transform_indices = @transform_2, window_bounds = array<i64: 8, 1>}, {transform_indices = @transform_3, window_bounds = array<i64: 1, 8, 128>}]} {
    %c0 = arith.constant 0 : index
    %c0_0 = arith.constant 0 : index
    %c0_1 = arith.constant 0 : index
    %0 = vector.load %arg2[%c0, %c0_0, %c0_1] : memref<1x4x128xf32, #tpu.memory_space<vmem>>, vector<1x4x128xf32>
    %1 = vector.shape_cast %0 : vector<1x4x128xf32> to vector<4x128xf32>
    %c0_2 = arith.constant 0 : index
    %c0_3 = arith.constant 0 : index
    %2 = vector.load %arg3[%c0_2, %c0_3] : memref<8x4xf32, #tpu.memory_space<vmem>>, vector<8x4xf32>
    %c0_4 = arith.constant 0 : index
    %c0_5 = arith.constant 0 : index
    %3 = vector.load %arg4[%c0_4, %c0_5] : memref<8x1xf32, #tpu.memory_space<vmem>>, vector<8x1xf32>
    %4 = vector.shape_cast %3 : vector<8x1xf32> to vector<8x1xf32>
    %5 = vector.broadcast %4 : vector<8x1xf32> to vector<8x128xf32>
    %6 = vector.extract_strided_slice %2 {offsets = [0, 0], sizes = [8, 1], strides = [1, 1]} : vector<8x4xf32> to vector<8x1xf32>
    %7 = vector.extract_strided_slice %1 {offsets = [0, 0], sizes = [1, 128], strides = [1, 1]} : vector<4x128xf32> to vector<1x128xf32>
    %8 = vector.broadcast %6 : vector<8x1xf32> to vector<8x128xf32>
    %9 = vector.broadcast %7 : vector<1x128xf32> to vector<8x128xf32>
    %10 = arith.mulf %8, %9 : vector<8x128xf32>
    %11 = arith.addf %5, %10 : vector<8x128xf32>
    %12 = vector.extract_strided_slice %2 {offsets = [0, 1], sizes = [8, 1], strides = [1, 1]} : vector<8x4xf32> to vector<8x1xf32>
    %13 = vector.extract_strided_slice %1 {offsets = [1, 0], sizes = [1, 128], strides = [1, 1]} : vector<4x128xf32> to vector<1x128xf32>
    %14 = vector.broadcast %12 : vector<8x1xf32> to vector<8x128xf32>
    %15 = vector.broadcast %13 : vector<1x128xf32> to vector<8x128xf32>
    %16 = arith.mulf %14, %15 : vector<8x128xf32>
    %17 = arith.addf %11, %16 : vector<8x128xf32>
    %18 = vector.extract_strided_slice %2 {offsets = [0, 2], sizes = [8, 1], strides = [1, 1]} : vector<8x4xf32> to vector<8x1xf32>
    %19 = vector.extract_strided_slice %1 {offsets = [2, 0], sizes = [1, 128], strides = [1, 1]} : vector<4x128xf32> to vector<1x128xf32>
    %20 = vector.broadcast %18 : vector<8x1xf32> to vector<8x128xf32>
    %21 = vector.broadcast %19 : vector<1x128xf32> to vector<8x128xf32>
    %22 = arith.mulf %20, %21 : vector<8x128xf32>
    %23 = arith.addf %17, %22 : vector<8x128xf32>
    %24 = vector.extract_strided_slice %2 {offsets = [0, 3], sizes = [8, 1], strides = [1, 1]} : vector<8x4xf32> to vector<8x1xf32>
    %25 = vector.extract_strided_slice %1 {offsets = [3, 0], sizes = [1, 128], strides = [1, 1]} : vector<4x128xf32> to vector<1x128xf32>
    %26 = vector.broadcast %24 : vector<8x1xf32> to vector<8x128xf32>
    %27 = vector.broadcast %25 : vector<1x128xf32> to vector<8x128xf32>
    %28 = arith.mulf %26, %27 : vector<8x128xf32>
    %29 = arith.addf %23, %28 : vector<8x128xf32>
    %c0_6 = arith.constant 0 : index
    %c0_7 = arith.constant 0 : index
    %c0_8 = arith.constant 0 : index
    %30 = vector.load %arg5[%c0_6, %c0_7, %c0_8] : memref<1x8x128xf32, #tpu.memory_space<vmem>>, vector<1x8x128xf32>
    %31 = vector.shape_cast %30 : vector<1x8x128xf32> to vector<8x128xf32>
    %32 = vector.shape_cast %29 : vector<8x128xf32> to vector<1x8x128xf32>
    tpu.vector_store %arg5[%c0_6, %c0_7, %c0_8], %32 {strides = array<i32>} : memref<1x8x128xf32, #tpu.memory_space<vmem>>, vector<1x8x128xf32>,
    return
  }
  func.func @transform_0(%arg0: i32, %arg1: i32) -> (i32, i32, i32) {
    %c0_i32 = arith.constant 0 : i32
    %c0_i32_0 = arith.constant 0 : i32
    return %arg0, %c0_i32, %arg1 : i32, i32, i32
  }
  func.func @transform_1(%arg0: i32, %arg1: i32) -> (i32, i32) {
    %c0_i32 = arith.constant 0 : i32
    %c0_i32_0 = arith.constant 0 : i32
    %c0_i32_1 = arith.constant 0 : i32
    return %c0_i32, %c0_i32_0 : i32, i32
  }
  func.func @transform_2(%arg0: i32, %arg1: i32) -> (i32, i32) {
    %c0_i32 = arith.constant 0 : i32
    %c0_i32_0 = arith.constant 0 : i32
    %c0_i32_1 = arith.constant 0 : i32
    return %c0_i32, %c0_i32_0 : i32, i32
  }
  func.func @transform_3(%arg0: i32, %arg1: i32) -> (i32, i32, i32) {
    %c0_i32 = arith.constant 0 : i32
    %c0_i32_0 = arith.constant 0 : i32
    return %arg0, %c0_i32, %arg1 : i32, i32, i32
  }
}

</mosaic_0001>

<bundles_post_ra>
// kernel: tpu_custom_call.1
= control target key start
LH: loop header
LB: loop body
LE: loop exit
PB: predicated region body
PF: predicated region fallthrough
CT: control target
= control target key end

     0   :  { %8 = vsyncpa [#allocation3], 0  ;;  %s679_s0 = inlined_call_operand.vmem [shape: f32[2,4,256], index: 0, kind: input, shape index: {}]   ;;  %s680_s1 = inlined_call_operand.vmem [shape: f32[8,4], index: 1, kind: input, shape index: {}]   ;;  %s681_s2 = inlined_call_operand.vmem [shape: f32[8,1], index: 2, kind: input, shape index: {}]   ;;  %s682_s3 = inlined_call_operand.hbm [shape: f32[2,8,256], index: 3, kind: output, shape index: {}]  }
   0x1   :  { %10 = vsyncpa [#allocation3 + $0x1], 0  ;;  %s549_s12 = smov 0   ;;  %s551_s13 = smov 0  }
   0x2   :  { %s553_s14 = smov 0   ;;  %s555_s15 = smov 0  }
   0x3   :  { %s557_s16 = smov 0   ;;  %s559_s17 = smov 0  }
   0x4   :  { %s561_s18 = smov 0   ;;  %s563_s19 = smov 0  }
   0x5 LB: > { %s338_s20 = sadd.s32 4294967295, %s522_s19   ;;  %s339_s21 = sadd.s32 4294967294, %s522_s19   ;;  %s522_s19 = sphi %s563_s19, %s16_s19   ;;  %s518_s18 = sphi %s561_s18, %s691_s18   ;;  %s514_s17 = sphi %s559_s17, %s690_s17   ;;  %s510_s16 = sphi %s557_s16, %s689_s16   ;;  %s506_s15 = sphi %s555_s15, %s688_s15   ;;  %s502_s14 = sphi %s553_s14, %s687_s14   ;;  %s498_s13 = sphi %s551_s13, %s686_s13   ;;  %s494_s12 = sphi %s549_s12, %s685_s12  }
   0x6   : > { %s25_s22 = sadd.s32 1, %s514_s17  ;;  %s28_s23 = sadd.s32 1, %s518_s18 }
   0x7   : > { %p26_p0 = scmp.ge.s32.totalorder %s25_s22, 2  ;;  %p117_p1 = scmp.ne.s32.totalorder %s502_s14, %s498_s13 }
   0x8   : > { %p118_p2 = scmp.eq.s32.totalorder %s338_s20, 3  ;;  %p123_p5 = scmp.ne.s32.totalorder %s498_s13, %s494_s12 }
   0x9   : > { %s693_s22 = smov (%p26_p0, %s25_s22), 0  ;;  %s695_s23 = smov (!%p26_p0, %s28_s23), %s518_s18 }
   0xa   : > { %s103_s24 = ssub.s32 %s514_s17, %s693_s22  ;;  %p600_p3 = por %p118_p2, %p117_p1 }
   0xb   : > { %p30_p4 = scmp.ge.s32.totalorder %s695_s23, 2  ;;  %p124_p6 = scmp.eq.s32.totalorder %s339_s21, 3 }
   0xc   : > { %p342_p7 = scmp.ge.s32.totalorder %s522_s19, 1  ;;  %p159_p9 = scmp.lt.s32.totalorder %s522_s19, 5 }
   0xd   : > { %s697_s23 = smov (%p30_p4, %s695_s23), 0  ;;  %p609_p8 = por %p124_p6, %p123_p5 }
   0xe   : > { %s102_s27 = ssub.s32 %s518_s18, %s697_s23  ;;  %s107_s28 = sadd.s32 1, %s502_s14 }
   0xf   : > { %s104_s29 = sor.u32 %s103_s24, %s102_s27  ;;  %p160_p10 = pnand %p342_p7, %p159_p9 }
  0x10   : > { %p105_p11 = scmp.eq.s32.totalorder %s104_s29, 0  ;;  %p186_p12 = scmp.lt.s32.totalorder (!%p160_p10), %s510_s16, 1 }
  0x11   : > { %163 = sbr.rel (%p160_p10) target bundleno = 174 (0xae), region = 32  ;;  %p188_p13 = scmp.lt.s32.totalorder (!%p160_p10), %s506_s15, 1 }
  0x12   : > { %s618_s30 = scalar_select %p105_p11, %s502_s14, %s107_s28  }
  0x13   : > { %s183_s28 = sand.u32 (!%p160_p10), 1, %s498_s13   ;;  %s347_s4 = sshll.u32 (!%p160_p10), %s510_s16, 1 }
  0x14   : > { %s343_s29 = sshll.u32 (!%p160_p10), %s183_s28, 3  ;;  %s256_s5 = sadd.s32 (!%p160_p10), %s506_s15, %s347_s4 }
  0x15   : > { %s348_s6 = sshll.u32 (!%p160_p10), %s256_s5, 7  ;;  %s185_s7 = scalar_lea.vmem (!%p160_p10), [#allocation2], %s343_s29 }
  0x16   : > { %v195_v0 = vld [vmem:[%s680_s1] sm:$0xff]  ;;  %v524_v1 = vmov 0   ;;  %v525_v2 = vmov 1   ;;  %v526_v4 = vmov 2   ;;  %v527_v5 = vmov 3   ;;  %s187_s8 = scalar_select %p186_p12, %s510_s16, 1 }
  0x17   : > { %426 = vset.pattern.permute.xlu0 %v524_v1  ;;  %427 = vset.pattern.permute.xlu1 %v525_v2  ;;  %v196_v3 = vld [vmem:[%s681_s2] sm:$0xff]  ;;  %s189_s9 = scalar_select %p188_p13, %s506_s15, 1  ;;  %v207_v6 = vlaneseq }
  0x18   : > { %204 = vperm.xlu0 %426, %v195_v0   ;;  %214 = vperm.xlu1 %427, %v195_v0   ;;  %s344_s10 = sshll.u32 %s187_s8, 1  ;;  %s260_s8 = sshll.u32 %s185_s7, 4  ;;  %s261_s8 = int_to_ptr.vmem [resolvable:$true] %s260_s8 }
  0x19   : > { %s191_s11 = sadd.s32 %s344_s10, %s189_s9  ;;  %v208_v7 = vshrl.u32 %v207_v6, 7  ;;  %s258_s16 = scalar_lea.hbm %s682_s3, %s348_s6 }
  0x1a   : > { %s345_s20 = sshll.u32 %s191_s11, 2  ;;  %s245_s11 = scalar_lea.sflag [#allocation3], %s183_s28 }
  0x1b   : > { %s193_s27 = scalar_lea.vmem %s679_s0, %s345_s20  ;;  %v209_v8 = vsub.s32 0, %v208_v7  ;;  %v219_v10 = vsub.s32 1, %v208_v7  ;;  %v229_v11 = vsub.s32 2, %v208_v7  ;;  %v239_v17 = vsub.s32 3, %v208_v7  ;;  %s430_s20 = scalar_lea.vmem %s261_s8, 128 }
  0x1c   : > { %199 = vperm.xlu0 %426, %v196_v3   ;;  %428 = vset.pattern.permute.xlu1 %v526_v4  ;;  %v194_v9 = vld [vmem:[%s193_s27] sm:$0xf]  ;;  %p431_p0 = scmp.ne.s32.totalorder %s261_s8, %s430_s20  ;;  %s528_s15 = smov [#allocation2]  }
  0x1d   : > { %224 = vperm.xlu1 %428, %v195_v0   ;;  %v210_v12 = vrot.slane %v194_v9, %v209_v8  ;;  %v220_v15 = vrot.slane %v194_v9, %v219_v10  ;;  %v230_v16 = vrot.slane %v194_v9, %v229_v11  ;;  %v240_v24 = vrot.slane %v194_v9, %v239_v17  ;;  %s434_s21 = sshll.u32 %s528_s15, 4  ;;  %s435_s21 = int_to_ptr.vmem [resolvable:$false] %s434_s21 }
  0x1e   : > { %p432_p1 = pnand %p431_p0, %p600_p3  ;;  %s436_s24 = scalar_lea.vmem %s435_s21, 256 }
  0x1f   : > { %p437_p4 = scmp.lt.s32.totalorder %s261_s8, %s435_s21  ;;  %p438_p5 = scmp.lt.s32.totalorder %s436_s24, %s430_s20 }
  0x20   : > { %429 = vset.pattern.permute.xlu0 %v527_v5  ;;  %p433_p2 = pneg %p432_p1 }
  0x21   : > { %234 = vperm.xlu0 %429, %v195_v0   ;;  %p439_p6 = por %p438_p5, %p437_p4 }
  0x23   : > { %p440_p7 = pnand %p439_p6, %p433_p2 }
  0x93   : > { %v205_v13 = vpop.permute.xlu0 %204  ;;  %v215_v14 = vpop.permute.xlu1 %214 }
  0x94   : > { %v211_v18 = vmul.f32 %v210_v12, %v205_v13  ;;  %v221_v20 = vmul.f32 %v220_v15, %v215_v14 }
  0x97   : > { %v200_v19 = vpop.permute.xlu0 %199 }
  0x98   : > { %v212_v21 = vadd.f32 %v211_v18, %v200_v19  ;;  %v225_v22 = vpop.permute.xlu1 %224 }
  0x99   : > { %v231_v23 = vmul.f32 %v230_v16, %v225_v22 }
  0x9a   : > { %v222_v25 = vadd.f32 %v221_v20, %v212_v21 }
  0x9c   : > { %v232_v26 = vadd.f32 %v231_v23, %v222_v25  ;;  %v235_v27 = vpop.permute.xlu0 %234 }
  0x9d   : > { %v241_v28 = vmul.f32 %v240_v24, %v235_v27 }
  0x9f   : > { %v242_v29 = vadd.f32 %v241_v28, %v232_v26 }
  0xa1   : > { %243 = vst [vmem:[%s185_s7] sm:$0xff] %v242_v29 }
  0xa2   : > { %443 = shalt.err (!%p440_p7)
}
  0xa3   : > { %s444_s27 = scalar_lea.hbm %s258_s16, 128  ;;  %s448_s4 = scalar_lea.hbm %s682_s3, 512 }
  0xa4   : > { %p445_p9 = scmp.ne.s32.totalorder %s258_s16, %s444_s27  ;;  %p449_p12 = scmp.lt.s32.totalorder %s258_s16, %s682_s3 }
  0xa5   : > { %p450_p13 = scmp.lt.s32.totalorder %s448_s4, %s444_s27 }
  0xa6   : > { %p446_p10 = pnand %p445_p9, %p600_p3 }
  0xa7   : > { %p451_p0 = por %p450_p13, %p449_p12 }
  0xa8   : > { %p447_p11 = pneg %p446_p10 }
  0xaa   : > { %p452_p1 = pnand %p451_p0, %p447_p11 }
  0xac   : > { %455 = shalt.err (!%p452_p1)
}
  0xad   : > { %351 = dma.vmem_to_hbm [thread:$0]  (%p600_p3), %s261_s8, 128, %s258_s16, %s245_s11  }
  0xae PF: > { %p357_p2 = scmp.ge.s32.totalorder %s522_s19, 2  ;;  %s272_s7 = sand.u32 1, %s494_s12  }
  0xaf   : > { %s273_s9 = scalar_lea.sflag [#allocation3], %s272_s7 }
  0xb0   : > { %p354_p4 = pnand %p357_p2, %p609_p8 }
  0xb2   : > { %p355_p5 = pneg %p354_p4 }
  0xb4   : > { %489 = dma.done.wait (%p355_p5), %s273_s9, 128  }
  0xb5   : > { %491 = vsyncadd (%p355_p5), %s273_s9, 4294967168  ;;  %s16_s19 = sadd.s32 1, %s522_s19   ;;  %s685_s12 = smov %s498_s13 }
  0xb6   : > { %p13_p6 = scmp.ge.s32.totalorder %s16_s19, 6   ;;  %s686_s13 = smov %s502_s14 }
  0xb7   : > { %s687_s14 = smov %s618_s30  ;;  %s688_s15 = smov %s514_s17 }
  0xb8   : > { %s689_s16 = smov %s518_s18  ;;  %s690_s17 = smov %s693_s22 }
  0xb9   : > { %s691_s18 = smov %s697_s23  ;;  %15 = sbr.rel (!%p13_p6) target bundleno = 5 (0x5), region = 67 }
  0xbe   :  { %278 = vsyncpa [#allocation3], 1 }
  0xbf   :  { %280 = vsyncpa [#allocation3 + $0x1], 1 }

</bundles_post_ra>
